<compile_context>
chip_gen: v7x
topology: tpu7x:2x2x1
jax: 0.10.0
libtpu: 0.0.40
codegen_flags: <defaults>
</compile_context>

<pallas_src>
import jax
import jax.numpy as jnp
from jax.experimental import pallas as pl
from jax.experimental.pallas import tpu as pltpu


def _round_up(x, m):
    return ((x + m - 1) // m) * m


def _cdiv(a, b):
    return -(-a // b)


# ----------------------------------------------------------------------------
# Kernel
# ----------------------------------------------------------------------------
def _generator_kernel(x_ref, w1_ref, b1_ref, w2_ref, b2_ref, w3_ref, b3_ref,
                      o_ref):
    # Cast the f32 activation tile to bf16 on load (hides under the MXU slot;
    # avoids a separate wrapper-side HBM convert pass over x).
    x = x_ref[...].astype(jnp.bfloat16)                  # (TB, in)   bf16

    # Biases are replicated to 8 sublanes for clean full-vreg loads; row 0
    # broadcasts in the f32 add.
    b1 = b1_ref[...][0:1, :]                             # (1, 256)   f32
    b2 = b2_ref[...][0:1, :]                             # (1, 512)   f32
    b3 = b3_ref[...][0:1, :]                             # (1, outp)  f32

    # Layer 1: Linear(input_dim, 256) + ReLU     (bf16 MXU, f32 accumulate)
    h1 = jnp.dot(x, w1_ref[...], preferred_element_type=jnp.float32)
    h1 = jnp.maximum(h1 + b1, 0.0)

    # Layer 2: Linear(256, 512) + ReLU
    h2 = jnp.dot(h1.astype(jnp.bfloat16), w2_ref[...],
                 preferred_element_type=jnp.float32)
    h2 = jnp.maximum(h2 + b2, 0.0)

    # Layer 3: Linear(512, output_dim) + Tanh
    h3 = jnp.dot(h2.astype(jnp.bfloat16), w3_ref[...],
                 preferred_element_type=jnp.float32)
    o_ref[...] = jnp.tanh(h3 + b3).astype(o_ref.dtype)   # bf16 store


# ----------------------------------------------------------------------------
# Tiling
# ----------------------------------------------------------------------------
def _choose_batch_tiling(B, batch_tile, granule=16):
    """Pick (tb, n_tiles) so that:
       * rows per step are a multiple of `granule` (bf16 output min-tile),
       * there are >= 2 grid steps with an even count whenever the batch
         allows it (v7x has 2 TCs; also lets DMA/writeback pipeline),
       * padded-row waste stays small for ragged batch sizes,
       * tb never exceeds `batch_tile`.
    """
    b_g = _round_up(B, granule)
    if b_g <= granule:
        return b_g, 1
    tb = min(batch_tile, _round_up(_cdiv(b_g, 2), granule))
    n = _cdiv(b_g, tb)
    if n > 1 and n % 2:
        n += 1
    # Shrink the tile to the minimum that still covers b_g in n steps
    # (limits wasted padded rows, e.g. B=300 -> tb=152, n=2, 4 pad rows).
    tb = _round_up(_cdiv(b_g, n), granule)
    n = _cdiv(b_g, tb)
    if n > 1 and n % 2:
        n += 1
    return tb, n


# ----------------------------------------------------------------------------
# Forward
# ----------------------------------------------------------------------------
def generator_forward(x, kparams, *, batch_tile=512):
    """Fused Generator MLP as one batch-tiled Pallas kernel.

    x:        (B, input_dim) float32
    kparams:  output of prepare_generator_params() - bf16 weights (in,out),
              f32 biases replicated to (8,out), layer 3 lane-padded to 128.
    Returns:  (B, output_dim) bfloat16.
    """
    w1, b1 = kparams["w1"], kparams["b1"]
    w2, b2 = kparams["w2"], kparams["b2"]
    w3, b3 = kparams["w3"], kparams["b3"]
    out_dim = kparams["out_dim"]

    B, in_dim = x.shape
    h1_dim = w1.shape[1]
    h2_dim = w2.shape[1]
    out_pad = w3.shape[1]

    tb, n_tiles = _choose_batch_tiling(B, batch_tile)
    b_pad = tb * n_tiles
    if b_pad != B:
        x = jnp.pad(x, ((0, b_pad - B), (0, 0)))

    # Weights/biases use a constant block index so they stay VMEM-resident
    # across grid steps (DMA'd once, never rotated).
    resident = lambda shape: pl.BlockSpec(shape, lambda i: (0, 0))

    grid_spec = pltpu.PrefetchScalarGridSpec(
        num_scalar_prefetch=0,
        grid=(n_tiles,),
        in_specs=[
            pl.BlockSpec((tb, in_dim), lambda i: (i, 0)),    # x tile (f32)
            resident((in_dim, h1_dim)),                      # w1 bf16
            resident((8, h1_dim)),                           # b1 f32
            resident((h1_dim, h2_dim)),                      # w2 bf16
            resident((8, h2_dim)),                           # b2 f32
            resident((h2_dim, out_pad)),                     # w3 bf16
            resident((8, out_pad)),                          # b3 f32
        ],
        out_specs=pl.BlockSpec((tb, out_pad), lambda i: (i, 0)),
    )

    out = pl.pallas_call(
        _generator_kernel,
        out_shape=jax.ShapeDtypeStruct((b_pad, out_pad), jnp.bfloat16),
        grid_spec=grid_spec,
        compiler_params=pltpu.CompilerParams(
            dimension_semantics=("parallel",)),
    )(x, w1, b1, w2, b2, w3, b3)

    if b_pad != B or out_pad != out_dim:
        out = out[:B, :out_dim]
    return out


# ----------------------------------------------------------------------------
# Parameters
# ----------------------------------------------------------------------------
def init_generator_params(key, input_dim, output_dim):
    """f32 parameters mirroring torch's default Linear init.
    Weights are stored (in, out) (transposed vs torch); biases are (1, out)."""
    k1, k2, k3, k4, k5, k6 = jax.random.split(key, 6)

    def lin(kw, kb, fan_in, fan_out):
        bound = 1.0 / jnp.sqrt(jnp.float32(fan_in))
        w = jax.random.uniform(kw, (fan_in, fan_out), jnp.float32,
                               minval=-bound, maxval=bound)
        b = jax.random.uniform(kb, (1, fan_out), jnp.float32,
                               minval=-bound, maxval=bound)
        return w, b

    w1, b1 = lin(k1, k2, input_dim, 256)
    w2, b2 = lin(k3, k4, 256, 512)
    w3, b3 = lin(k5, k6, 512, output_dim)
    return {"w1": w1, "b1": b1, "w2": w2, "b2": b2, "w3": w3, "b3": b3}


def prepare_generator_params(params, *, lane=128):
    """ONE-TIME per-model prep (not per forward call): bf16-cast weights,
    lane-pad the final layer to a multiple of 128 (dense output stores), and
    replicate biases to 8 sublanes (full-vreg loads in the kernel)."""
    w1, b1 = params["w1"], params["b1"]
    w2, b2 = params["w2"], params["b2"]
    w3, b3 = params["w3"], params["b3"]
    out_dim = w3.shape[1]
    out_pad = _round_up(max(out_dim, lane), lane)
    if out_pad != out_dim:
        w3 = jnp.pad(w3, ((0, 0), (0, out_pad - out_dim)))
        b3 = jnp.pad(b3, ((0, 0), (0, out_pad - out_dim)))
    rep = lambda b: jnp.tile(b.astype(jnp.float32), (8, 1))
    return {
        "w1": w1.astype(jnp.bfloat16), "b1": rep(b1),
        "w2": w2.astype(jnp.bfloat16), "b2": rep(b2),
        "w3": w3.astype(jnp.bfloat16), "b3": rep(b3),
        "out_dim": out_dim,
    }


# ----------------------------------------------------------------------------
# References
# ----------------------------------------------------------------------------
def _reference_forward_bf16(x, p):
    """Pure-JAX reference with the same bf16-operand / f32-accum recipe."""
    xb = x.astype(jnp.bfloat16)
    w1 = p["w1"].astype(jnp.bfloat16)
    w2 = p["w2"].astype(jnp.bfloat16)
    w3 = p["w3"].astype(jnp.bfloat16)
    h1 = jnp.maximum(
        jnp.dot(xb, w1, preferred_element_type=jnp.float32) + p["b1"], 0.0)
    h2 = jnp.maximum(
        jnp.dot(h1.astype(jnp.bfloat16), w2,
                preferred_element_type=jnp.float32) + p["b2"], 0.0)
    return jnp.tanh(
        jnp.dot(h2.astype(jnp.bfloat16), w3,
                preferred_element_type=jnp.float32) + p["b3"])


def _reference_forward_f32(x, p):
    h1 = jnp.maximum(x @ p["w1"] + p["b1"], 0.0)
    h2 = jnp.maximum(h1 @ p["w2"] + p["b2"], 0.0)
    return jnp.tanh(h2 @ p["w3"] + p["b3"])


if __name__ == "__main__":
    input_dim = 64
    output_dim = 64
    batch = 32            # -> tb=16, grid=(2,): exercises the multi-tile path

    key = jax.random.PRNGKey(0)
    kx, kp = jax.random.split(key)

    x = jax.random.normal(kx, (batch, input_dim), jnp.float32)
    params = init_generator_params(kp, input_dim, output_dim)
    kparams = prepare_generator_params(params)     # one-time prep

    out = generator_forward(x, kparams)
    out = jax.block_until_ready(out)
    assert out.shape == (batch, output_dim)
    assert out.dtype == jnp.bfloat16

    out_f32 = out.astype(jnp.float32)
    ref_bf16 = _reference_forward_bf16(x, params)
    ref_f32 = _reference_forward_f32(x, params)
    assert jnp.allclose(out_f32, ref_bf16, atol=2e-2, rtol=2e-2), \
        float(jnp.max(jnp.abs(out_f32 - ref_bf16)))
    assert jnp.allclose(out_f32, ref_f32, atol=5e-2, rtol=5e-2), \
        float(jnp.max(jnp.abs(out_f32 - ref_f32)))

    print("KERNEL_OK")
</pallas_src>

<mosaic_0001>
module attributes {stable_mosaic.version = 11 : i64} {
  func.func @_generator_kernel(%arg0: i32, %arg1: memref<16x64xf32, #tpu.memory_space<vmem>>, %arg2: memref<64x256xbf16, #tpu.memory_space<vmem>>, %arg3: memref<8x256xf32, #tpu.memory_space<vmem>>, %arg4: memref<256x512xbf16, #tpu.memory_space<vmem>>, %arg5: memref<8x512xf32, #tpu.memory_space<vmem>>, %arg6: memref<512x128xbf16, #tpu.memory_space<vmem>>, %arg7: memref<8x128xf32, #tpu.memory_space<vmem>>, %arg8: memref<16x128xbf16, #tpu.memory_space<vmem>>) attributes {dimension_semantics = [#tpu.dimension_semantics<parallel>], iteration_bounds = array<i64: 2>, scalar_prefetch = 0 : i64, scratch_operands = 0 : i64, tpu.core_type = #tpu.core_type<tc>, window_params = [{transform_indices = @transform_0, window_bounds = array<i64: 16, 64>}, {pipeline_mode = #tpu.pipeline_mode<synchronous>, transform_indices = @transform_1, window_bounds = array<i64: 64, 256>}, {pipeline_mode = #tpu.pipeline_mode<synchronous>, transform_indices = @transform_2, window_bounds = array<i64: 8, 256>}, {pipeline_mode = #tpu.pipeline_mode<synchronous>, transform_indices = @transform_3, window_bounds = array<i64: 256, 512>}, {pipeline_mode = #tpu.pipeline_mode<synchronous>, transform_indices = @transform_4, window_bounds = array<i64: 8, 512>}, {pipeline_mode = #tpu.pipeline_mode<synchronous>, transform_indices = @transform_5, window_bounds = array<i64: 512, 128>}, {pipeline_mode = #tpu.pipeline_mode<synchronous>, transform_indices = @transform_6, window_bounds = array<i64: 8, 128>}, {transform_indices = @transform_7, window_bounds = array<i64: 16, 128>}]} {
    %c0 = arith.constant 0 : index
    %c0_0 = arith.constant 0 : index
    %0 = vector.load %arg1[%c0, %c0_0] : memref<16x64xf32, #tpu.memory_space<vmem>>, vector<16x64xf32>
    %1 = arith.truncf %0 : vector<16x64xf32> to vector<16x64xbf16>
    %c0_1 = arith.constant 0 : index
    %c0_2 = arith.constant 0 : index
    %2 = vector.load %arg3[%c0_1, %c0_2] : memref<8x256xf32, #tpu.memory_space<vmem>>, vector<8x256xf32>
    %3 = vector.extract_strided_slice %2 {offsets = [0, 0], sizes = [1, 256], strides = [1, 1]} : vector<8x256xf32> to vector<1x256xf32>
    %c0_3 = arith.constant 0 : index
    %c0_4 = arith.constant 0 : index
    %4 = vector.load %arg5[%c0_3, %c0_4] : memref<8x512xf32, #tpu.memory_space<vmem>>, vector<8x512xf32>
    %5 = vector.extract_strided_slice %4 {offsets = [0, 0], sizes = [1, 512], strides = [1, 1]} : vector<8x512xf32> to vector<1x512xf32>
    %c0_5 = arith.constant 0 : index
    %c0_6 = arith.constant 0 : index
    %6 = vector.load %arg7[%c0_5, %c0_6] : memref<8x128xf32, #tpu.memory_space<vmem>>, vector<8x128xf32>
    %7 = vector.extract_strided_slice %6 {offsets = [0, 0], sizes = [1, 128], strides = [1, 1]} : vector<8x128xf32> to vector<1x128xf32>
    %c0_7 = arith.constant 0 : index
    %c0_8 = arith.constant 0 : index
    %8 = vector.load %arg2[%c0_7, %c0_8] : memref<64x256xbf16, #tpu.memory_space<vmem>>, vector<64x256xbf16>
    %cst = arith.constant dense<0.000000e+00> : vector<16x256xf32>
    %9 = tpu.matmul %1, %8, %cst {dimension_numbers = #tpu.dot_dimension_numbers<[1], [0], [0], [1], [0, 0, 1, 1], [], []>} : vector<16x64xbf16>, vector<64x256xbf16>, vector<16x256xf32> -> vector<16x256xf32>
    %10 = vector.broadcast %3 : vector<1x256xf32> to vector<16x256xf32>
    %11 = arith.addf %9, %10 : vector<16x256xf32>
    %cst_9 = arith.constant 0.000000e+00 : f32
    %12 = vector.broadcast %cst_9 : f32 to vector<16x256xf32>
    %13 = arith.maximumf %11, %12 : vector<16x256xf32>
    %14 = arith.truncf %13 : vector<16x256xf32> to vector<16x256xbf16>
    %c0_10 = arith.constant 0 : index
    %c0_11 = arith.constant 0 : index
    %15 = vector.load %arg4[%c0_10, %c0_11] : memref<256x512xbf16, #tpu.memory_space<vmem>>, vector<256x512xbf16>
    %cst_12 = arith.constant dense<0.000000e+00> : vector<16x512xf32>
    %16 = tpu.matmul %14, %15, %cst_12 {dimension_numbers = #tpu.dot_dimension_numbers<[1], [0], [0], [1], [0, 0, 1, 1], [], []>} : vector<16x256xbf16>, vector<256x512xbf16>, vector<16x512xf32> -> vector<16x512xf32>
    %17 = vector.broadcast %5 : vector<1x512xf32> to vector<16x512xf32>
    %18 = arith.addf %16, %17 : vector<16x512xf32>
    %cst_13 = arith.constant 0.000000e+00 : f32
    %19 = vector.broadcast %cst_13 : f32 to vector<16x512xf32>
    %20 = arith.maximumf %18, %19 : vector<16x512xf32>
    %21 = arith.truncf %20 : vector<16x512xf32> to vector<16x512xbf16>
    %c0_14 = arith.constant 0 : index
    %c0_15 = arith.constant 0 : index
    %22 = vector.load %arg6[%c0_14, %c0_15] : memref<512x128xbf16, #tpu.memory_space<vmem>>, vector<512x128xbf16>
    %cst_16 = arith.constant dense<0.000000e+00> : vector<16x128xf32>
    %23 = tpu.matmul %21, %22, %cst_16 {dimension_numbers = #tpu.dot_dimension_numbers<[1], [0], [0], [1], [0, 0, 1, 1], [], []>} : vector<16x512xbf16>, vector<512x128xbf16>, vector<16x128xf32> -> vector<16x128xf32>
    %24 = vector.broadcast %7 : vector<1x128xf32> to vector<16x128xf32>
    %25 = arith.addf %23, %24 : vector<16x128xf32>
    %26 = math.tanh %25 : vector<16x128xf32>
    %27 = arith.truncf %26 : vector<16x128xf32> to vector<16x128xbf16>
    %c0_17 = arith.constant 0 : index
    %c0_18 = arith.constant 0 : index
    %28 = vector.load %arg8[%c0_17, %c0_18] : memref<16x128xbf16, #tpu.memory_space<vmem>>, vector<16x128xbf16>
    tpu.vector_store %arg8[%c0_17, %c0_18], %27 {strides = array<i32>} : memref<16x128xbf16, #tpu.memory_space<vmem>>, vector<16x128xbf16>,
    return
  }
  func.func @transform_0(%arg0: i32) -> (i32, i32) {
    %c0_i32 = arith.constant 0 : i32
    %c0_i32_0 = arith.constant 0 : i32
    return %arg0, %c0_i32 : i32, i32
  }
  func.func @transform_1(%arg0: i32) -> (i32, i32) {
    %c0_i32 = arith.constant 0 : i32
    %c0_i32_0 = arith.constant 0 : i32
    %c0_i32_1 = arith.constant 0 : i32
    return %c0_i32, %c0_i32_0 : i32, i32
  }
  func.func @transform_2(%arg0: i32) -> (i32, i32) {
    %c0_i32 = arith.constant 0 : i32
    %c0_i32_0 = arith.constant 0 : i32
    %c0_i32_1 = arith.constant 0 : i32
    return %c0_i32, %c0_i32_0 : i32, i32
  }
  func.func @transform_3(%arg0: i32) -> (i32, i32) {
    %c0_i32 = arith.constant 0 : i32
    %c0_i32_0 = arith.constant 0 : i32
    %c0_i32_1 = arith.constant 0 : i32
    return %c0_i32, %c0_i32_0 : i32, i32
  }
  func.func @transform_4(%arg0: i32) -> (i32, i32) {
    %c0_i32 = arith.constant 0 : i32
    %c0_i32_0 = arith.constant 0 : i32
    %c0_i32_1 = arith.constant 0 : i32
    return %c0_i32, %c0_i32_0 : i32, i32
  }
  func.func @transform_5(%arg0: i32) -> (i32, i32) {
    %c0_i32 = arith.constant 0 : i32
    %c0_i32_0 = arith.constant 0 : i32
    %c0_i32_1 = arith.constant 0 : i32
    return %c0_i32, %c0_i32_0 : i32, i32
  }
  func.func @transform_6(%arg0: i32) -> (i32, i32) {
    %c0_i32 = arith.constant 0 : i32
    %c0_i32_0 = arith.constant 0 : i32
    %c0_i32_1 = arith.constant 0 : i32
    return %c0_i32, %c0_i32_0 : i32, i32
  }
  func.func @transform_7(%arg0: i32) -> (i32, i32) {
    %c0_i32 = arith.constant 0 : i32
    %c0_i32_0 = arith.constant 0 : i32
    return %arg0, %c0_i32 : i32, i32
  }
}

</mosaic_0001>

<bundles_post_ra>
// kernel: tpu_custom_call.1
= control target key start
LH: loop header
LB: loop body
LE: loop exit
PB: predicated region body
PF: predicated region fallthrough
CT: control target
= control target key end

     0   :  { %12 = vsyncpa [#allocation3], 0  ;;  %s2531_s0 = inlined_call_operand.hbm [shape: f32[32,64], index: 0, kind: input, shape index: {}]   ;;  %s2532_s1 = inlined_call_operand.hbm [shape: bf16[64,256], index: 1, kind: input, shape index: {}]   ;;  %s2533_s2 = inlined_call_operand.hbm [shape: f32[8,256], index: 2, kind: input, shape index: {}]   ;;  %s2534_s3 = inlined_call_operand.hbm [shape: bf16[256,512], index: 3, kind: input, shape index: {}]   ;;  %s2535_s4 = inlined_call_operand.hbm [shape: f32[8,512], index: 4, kind: input, shape index: {}]   ;;  %s2536_s5 = inlined_call_operand.hbm [shape: bf16[512,128], index: 5, kind: input, shape index: {}]   ;;  %s2537_s6 = inlined_call_operand.vmem [shape: f32[8,128], index: 6, kind: input, shape index: {}]   ;;  %s2538_s7 = inlined_call_operand.hbm [shape: bf16[32,128], index: 7, kind: output, shape index: {}]  }
   0x1   :  { %14 = vsyncpa [#allocation3 + $0x1], 0 }
   0x2   :  { %15 = vsyncpa [#allocation6], 0 }
   0x3   :  { %16 = vsyncpa [#allocation9], 0 }
   0x4   :  { %17 = vsyncpa [#allocation12], 0 }
   0x5   :  { %18 = vsyncpa [#allocation4], 0 }
   0x6   :  { %20 = vsyncpa [#allocation4 + $0x1], 0  ;;  %s2215_s24 = smov 0   ;;  %s2217_s25 = smov 0  }
   0x7   :  { %s2219_s26 = smov 0   ;;  %s2221_s27 = smov 0  }
   0x8 LB: > { %s2159_s28 = smov [#allocation5]   ;;  %s2236_s30 = sadd.s32 4294967295, %s2157_s27   ;;  %s2157_s27 = sphi %s2221_s27, %s2565_s27   ;;  %s2153_s26 = sphi %s2219_s26, %s2564_s26   ;;  %s2149_s25 = sphi %s2217_s25, %s2563_s25   ;;  %s2145_s24 = sphi %s2215_s24, %s2562_s24  }
   0x9   : > { %s221_s29 = sshll.u32 %s2159_s28, 4  ;;  %p1476_p0 = scmp.ge.s32.totalorder %s2157_s27, 1  ;;  %s2241_s29 = int_to_ptr.vmem [resolvable:$true] %s221_s29 }
   0xa   : > { %p2539_p1 = scmp.eq.s32.totalorder %s2236_s30, 0  ;;  %p209_p2 = scmp.lt.s32.totalorder %s2157_s27, 3 }
   0xb   : > { %s2160_s9 = smov [#allocation8]   ;;  %s2161_s12 = smov [#allocation7]  }
   0xc   : > { %p2243_p3 = pnand %p1476_p0, %p209_p2  ;;  %s245_s10 = sshll.u32 %s2160_s9, 4  ;;  %s2256_s10 = int_to_ptr.vmem [resolvable:$true] %s245_s10 }
   0xd   : > { %s2258_s13 = sshll.u32 %s2161_s12, 4  ;;  %s1909_s16 = scalar_lea.hbm %s2532_s1, 1024  ;;  %s236_s13 = int_to_ptr.vmem [resolvable:$true] %s2258_s13 }
   0xe   : > { %s2543_s8 = scalar_select %p2243_p3, 1, 0 }
   0xf   : > { %p1683_p5 = pneg %p2243_p3  ;;  %p1910_p7 = scmp.ne.s32.totalorder %s2532_s1, %s1909_s16 }
  0x10   : > { %p1916_p11 = scmp.lt.u32.totalorder %s1909_s16, %s2532_s1 }
  0x11   : > { %p2252_p6 = pnand %p1683_p5, %p2539_p1 }
  0x13   : > { %p2268_p8 = pneg %p2252_p6 }
  0x15   : > { %p1912_p9 = pnand %p2268_p8, %p1910_p7 }
  0x17   : > { %p1913_p10 = pneg %p1912_p9 }
  0x19   : > { %p1918_p12 = pnand %p1916_p11, %p1913_p10 }
  0x1b   : > { %1921 = shalt.err (!%p1918_p12)
}
  0x1c   : > { %s1922_s22 = scalar_lea.vmem %s2241_s29, 1024  ;;  %p1930_p5 = scmp.lt.s32.totalorder %s2241_s29, %s2241_s29 }
  0x1d   : > { %p1923_p13 = scmp.ne.s32.totalorder %s2241_s29, %s1922_s22  ;;  %p1931_p4 = scmp.lt.s32.totalorder %s1922_s22, %s1922_s22 }
  0x1f   : > { %p1925_p0 = pnand %p1923_p13, %p2268_p8  ;;  %p1932_p7 = por %p1931_p4, %p1930_p5 }
  0x21   : > { %p1926_p2 = pneg %p1925_p0 }
  0x23   : > { %p1933_p9 = pnand %p1932_p7, %p1926_p2 }
  0x25   : > { %1936 = shalt.err (!%p1933_p9)
}
  0x26   : > { %s2541_s23 = smov 128   ;;  %s2163_s28 = smov 8  }
  0x27   : > { %1686 = dma.hbm_to_vmem [thread:$0]  (!%p2252_p6), %s2532_s1, 1024, %s2241_s29, [#allocation6], %s2541_s23, %s2541_s23, %s2163_s28  }
  0x28   : > { %s1937_s16 = scalar_lea.hbm %s2534_s3, 8192 }
  0x29   : > { %p1938_p4 = scmp.ne.s32.totalorder %s2534_s3, %s1937_s16  ;;  %p1944_p12 = scmp.lt.u32.totalorder %s1937_s16, %s2534_s3 }
  0x2b   : > { %p1940_p10 = pnand %p1938_p4, %p2268_p8 }
  0x2d   : > { %p1941_p11 = pneg %p1940_p10 }
  0x2f   : > { %p1946_p13 = pnand %p1944_p12, %p1941_p11 }
  0x31   : > { %1949 = shalt.err (!%p1946_p13)
}
  0x32   : > { %s1950_s29 = scalar_lea.vmem %s2256_s10, 8192  ;;  %p1958_p7 = scmp.lt.s32.totalorder %s2256_s10, %s2256_s10 }
  0x33   : > { %p1951_p0 = scmp.ne.s32.totalorder %s2256_s10, %s1950_s29  ;;  %p1959_p9 = scmp.lt.s32.totalorder %s1950_s29, %s1950_s29 }
  0x35   : > { %p1953_p2 = pnand %p1951_p0, %p2268_p8  ;;  %p1960_p4 = por %p1959_p9, %p1958_p7 }
  0x37   : > { %p1954_p5 = pneg %p1953_p2 }
  0x39   : > { %p1961_p10 = pnand %p1960_p4, %p1954_p5 }
  0x3b   : > { %1964 = shalt.err (!%p1961_p10)
}
  0x3c   : > { %s2164_s22 = smov 256   ;;  %s2165_s9 = smov 16  }
  0x3d   : > { %1692 = dma.hbm_to_vmem [thread:$0]  (!%p2252_p6), %s2534_s3, 8192, %s2256_s10, [#allocation9], %s2164_s22, %s2164_s22, %s2165_s9  }
  0x3e   : > { %s1965_s17 = scalar_lea.hbm %s2533_s2, 256 }
  0x3f   : > { %p1966_p11 = scmp.ne.s32.totalorder %s2533_s2, %s1965_s17  ;;  %p1972_p0 = scmp.lt.u32.totalorder %s1965_s17, %s2533_s2 }
  0x41   : > { %p1968_p12 = pnand %p1966_p11, %p2268_p8 }
  0x43   : > { %p1969_p13 = pneg %p1968_p12 }
  0x45   : > { %p1974_p2 = pnand %p1972_p0, %p1969_p13 }
  0x47   : > { %1977 = shalt.err (!%p1974_p2)
}
  0x48   : > { %s1978_s12 = scalar_lea.vmem %s236_s13, 256  ;;  %p1986_p4 = scmp.lt.s32.totalorder %s236_s13, %s236_s13 }
  0x49   : > { %p1979_p5 = scmp.ne.s32.totalorder %s236_s13, %s1978_s12  ;;  %p1987_p10 = scmp.lt.s32.totalorder %s1978_s12, %s1978_s12 }
  0x4b   : > { %p1981_p7 = pnand %p1979_p5, %p2268_p8  ;;  %p1988_p1 = por %p1987_p10, %p1986_p4 }
  0x4d   : > { %p1982_p9 = pneg %p1981_p7 }
  0x4f   : > { %p1989_p3 = pnand %p1988_p1, %p1982_p9 }
  0x51   : > { %1992 = shalt.err (!%p1989_p3)
}
  0x52   : > { %1689 = dma.hbm_to_vmem [thread:$0]  (!%p2252_p6), %s2533_s2, 256, %s236_s13, [#allocation6]  }
  0x53   : > { %s2166_s9 = smov [#allocation10]   ;;  %s2167_s15 = smov [#allocation11]  }
  0x54   : > { %s259_s14 = sshll.u32 %s2166_s9, 4  ;;  %s269_s16 = sshll.u32 %s2167_s15, 4  ;;  %s260_s14 = int_to_ptr.vmem [resolvable:$true] %s259_s14  ;;  %s270_s16 = int_to_ptr.vmem [resolvable:$true] %s269_s16 }
  0x55   : > { %s1993_s20 = scalar_lea.hbm %s2535_s4, 512 }
  0x56   : > { %p1994_p1 = scmp.ne.s32.totalorder %s2535_s4, %s1993_s20  ;;  %p2000_p12 = scmp.lt.u32.totalorder %s1993_s20, %s2535_s4 }
  0x58   : > { %p1996_p3 = pnand %p1994_p1, %p2268_p8 }
  0x5a   : > { %p1997_p11 = pneg %p1996_p3 }
  0x5c   : > { %p2002_p13 = pnand %p2000_p12, %p1997_p11 }
  0x5e   : > { %2005 = shalt.err (!%p2002_p13)
}
  0x5f   : > { %s2006_s13 = scalar_lea.vmem %s260_s14, 512  ;;  %p2014_p7 = scmp.lt.s32.totalorder %s260_s14, %s260_s14 }
  0x60   : > { %p2007_p0 = scmp.ne.s32.totalorder %s260_s14, %s2006_s13  ;;  %p2015_p9 = scmp.lt.s32.totalorder %s2006_s13, %s2006_s13 }
  0x62   : > { %p2009_p2 = pnand %p2007_p0, %p2268_p8  ;;  %p2016_p4 = por %p2015_p9, %p2014_p7 }
  0x64   : > { %p2010_p5 = pneg %p2009_p2 }
  0x66   : > { %p2017_p10 = pnand %p2016_p4, %p2010_p5 }
  0x68   : > { %2020 = shalt.err (!%p2017_p10)
}
  0x69   : > { %1695 = dma.hbm_to_vmem [thread:$0]  (!%p2252_p6), %s2535_s4, 512, %s260_s14, [#allocation9]  }
  0x6a   : > { %s2021_s18 = scalar_lea.hbm %s2536_s5, 4096 }
  0x6b   : > { %p2022_p1 = scmp.ne.s32.totalorder %s2536_s5, %s2021_s18  ;;  %p2028_p12 = scmp.lt.u32.totalorder %s2021_s18, %s2536_s5 }
  0x6d   : > { %p2024_p3 = pnand %p2022_p1, %p2268_p8 }
  0x6f   : > { %p2025_p11 = pneg %p2024_p3 }
  0x71   : > { %p2030_p13 = pnand %p2028_p12, %p2025_p11 }
  0x73   : > { %2033 = shalt.err (!%p2030_p13)
}
  0x74   : > { %s2034_s10 = scalar_lea.vmem %s270_s16, 4096  ;;  %p2042_p7 = scmp.lt.s32.totalorder %s270_s16, %s270_s16 }
  0x75   : > { %p2035_p0 = scmp.ne.s32.totalorder %s270_s16, %s2034_s10  ;;  %p2043_p9 = scmp.lt.s32.totalorder %s2034_s10, %s2034_s10 }
  0x77   : > { %p2037_p2 = pnand %p2035_p0, %p2268_p8  ;;  %p2044_p4 = por %p2043_p9, %p2042_p7 }
  0x79   : > { %p2038_p5 = pneg %p2037_p2 }
  0x7b   : > { %p2045_p10 = pnand %p2044_p4, %p2038_p5 }
  0x7d   : > { %2048 = shalt.err (!%p2045_p10)
}
  0x7e   : > { %s2168_s14 = smov 64   ;;  %s2169_s19 = smov 4  }
  0x7f   : > { %1698 = dma.hbm_to_vmem [thread:$0]  (!%p2252_p6), %s2536_s5, 4096, %s270_s16, [#allocation12], %s2168_s14, %s2168_s14, %s2169_s19  }
  0x80   : > { %s1475_s9 = sadd.s32 4294967294, %s2157_s27   ;;  %s2372_s15 = sadd.s32 1, %s2157_s27  }
  0x81   : > { %s33_s17 = sadd.s32 1, %s2153_s26  ;;  %s30_s18 = ssub.s32 %s2157_s27, %s2372_s15 }
  0x82   : > { %p40_p8 = scmp.ne.s32.totalorder %s2153_s26, %s2149_s25  ;;  %p31_p1 = scmp.eq.s32.totalorder %s30_s18, 0 }
  0x83   : > { %p41_p3 = scmp.eq.s32.totalorder %s2157_s27, 0  ;;  %p46_p11 = scmp.ne.s32.totalorder %s2149_s25, %s2145_s24 }
  0x84   : > { %p196_p12 = scmp.eq.s32.totalorder %s2236_s30, 1  ;;  %p2546_p0 = scmp.eq.s32.totalorder %s2236_s30, 0 }
  0x85   : > { %s2384_s20 = scalar_select %p31_p1, %s2153_s26, %s33_s17  }
  0x86   : > { %p42_p13 = por %p41_p3, %p40_p8  ;;  %p2388_p2 = por %p2546_p0, %p46_p11 }
  0x87   : > { %p2392_p6 = por %p196_p12, %p40_p8  ;;  %p202_p5 = scmp.eq.s32.totalorder %s1475_s9, 1 }
  0x88   : > { %p1712_p7 = scmp.lt.s32.totalorder %s2157_s27, 2  ;;  %s286_s21 = sand.u32 1, %s2153_s26  }
  0x89   : > { %s2548_s16 = scalar_select %p2392_p6, 1, 0 }
  0x8a   : > { %p2398_p9 = por %p202_p5, %p46_p11  ;;  %s1483_s12 = sshll.u32 %s286_s21, 4 }
  0x8b   : > { %s1606_s10 = sshll.u32 %s2157_s27, 8  ;;  %s290_s22 = scalar_lea.vmem [#allocation2], %s1483_s12 }
  0x8c   : > { %s2549_s29 = scalar_select %p2398_p9, 1, 0 }
  0x8d   : > { %s2406_s13 = scalar_lea.hbm %s2531_s0, %s1606_s10  ;;  %s297_s17 = sshll.u32 %s290_s22, 4  ;;  %s2412_s17 = int_to_ptr.vmem [resolvable:$true] %s297_s17 }
  0x8e   : > { %p2408_p4 = pnand %p1712_p7, %p42_p13  ;;  %s2414_s18 = scalar_lea.sflag [#allocation3], %s286_s21 }
  0x8f   : > { %s2049_s23 = scalar_lea.hbm %s2406_s13, 256  ;;  %s2054_s14 = scalar_lea.hbm %s2531_s0, 512 }
  0x90   : > { %p2050_p10 = scmp.ne.s32.totalorder %s2406_s13, %s2049_s23  ;;  %p2051_p8 = pneg %p2408_p4 }
  0x91   : > { %p2055_p11 = scmp.lt.u32.totalorder %s2406_s13, %s2531_s0  ;;  %p2056_p12 = scmp.lt.u32.totalorder %s2054_s14, %s2049_s23 }
  0x92   : > { %p2052_p1 = pnand %p2051_p8, %p2050_p10  ;;  %p2058_p0 = scmp.lt.u32.totalorder %s2049_s23, %s2406_s13 }
  0x93   : > { %p2057_p13 = por %p2056_p12, %p2055_p11 }
  0x94   : > { %p2053_p3 = pneg %p2052_p1 }
  0x95   : > { %p2059_p5 = por %p2058_p0, %p2057_p13 }
  0x97   : > { %p2060_p7 = pnand %p2059_p5, %p2053_p3 }
  0x99   : > { %2063 = shalt.err (!%p2060_p7)
}
  0x9a   : > { %s2064_s21 = scalar_lea.vmem %s2412_s17, 256  ;;  %s2170_s12 = smov [#allocation2]  }
  0x9b   : > { %p2065_p10 = scmp.ne.s32.totalorder %s2412_s17, %s2064_s21  ;;  %s2069_s10 = sshll.u32 %s2170_s12, 4  ;;  %s2070_s10 = int_to_ptr.vmem [resolvable:$false] %s2069_s10 }
  0x9c   : > { %s2071_s19 = scalar_lea.vmem %s2070_s10, 512  ;;  %p2072_p6 = scmp.lt.s32.totalorder %s2412_s17, %s2070_s10 }
  0x9d   : > { %p2067_p1 = pnand %p2065_p10, %p2051_p8  ;;  %p2073_p11 = scmp.lt.s32.totalorder %s2071_s19, %s2064_s21 }
  0x9f   : > { %p2068_p9 = pneg %p2067_p1  ;;  %p2074_p12 = por %p2073_p11, %p2072_p6 }
  0xa1   : > { %p2075_p13 = pnand %p2074_p12, %p2068_p9 }
  0xa3   : > { %2078 = shalt.err (!%p2075_p13)
}
  0xa4   : > { %s2551_s23 = smov 128   ;;  %p2552_p8 = scmp.ne.s32.totalorder %s2543_s8, 0 }
  0xa5   : > { %1702 = dma.hbm_to_vmem [thread:$0]  (!%p2408_p4), %s2406_s13, 256, %s2412_s17, %s2414_s18, %s2551_s23, %s2551_s23, %s2163_s28  }
  0xa6   : > { %309 = sbr.rel (%p2552_p8) target bundleno = 894 (0x37e), region = 48  ;;  %s2448_s14 = sand.u32 (!%p2552_p8), 1, %s2149_s25  }
  0xa7   : > { %s1487_s22 = sshll.u32 (!%p2552_p8), %s2448_s14, 4  ;;  %s312_s21 = scalar_lea.sflag (!%p2552_p8), [#allocation3], %s2448_s14 }
  0xa8   : > { %s315_s12 = scalar_lea.vmem (!%p2552_p8), [#allocation2], %s1487_s22 }
  0xad   : > { %2124 = dma.done.wait (%p2388_p2), %s312_s21, 256  }
  0xae   : > { %2126 = vsyncadd (%p2388_p2), %s312_s21, 4294967040  ;;  %p2553_p6 = scmp.eq.s32.totalorder %s2236_s30, 0 }
  0xb0   : > { %2128 = dma.done.wait (%p2553_p6), [#allocation6], 1280   ;;  %p2554_p9 = pmov %p2553_p6 }
  0xb1   : > { %p2555_p4 = pmov %p2553_p6 }
  0xb2   : > { %2130 = vsyncadd (%p2554_p9), [#allocation6], 4294966016 }
  0xb3   : > { %2132 = dma.done.wait (%p2555_p4), [#allocation9], 8704   ;;  %p2556_p3 = pmov %p2555_p4 }
  0xb5   : > { %2134 = vsyncadd (%p2556_p3), [#allocation9], 4294958592  ;;  %p2557_p0 = pmov %p2556_p3 }
  0xb7   : > { %2136 = dma.done.wait (%p2557_p0), [#allocation12], 4096   ;;  %p2558_p5 = pmov %p2557_p0 }
  0xb8   : > { %v2171_v0 = vmov 0   ;;  %v1765_v1 = vld [vmem:[#allocation5 + $0x4] ss:$8 sps:$4 sm:$0xff]   ;;  %v1767_v2 = vld [vmem:[#allocation5] ss:$8 sps:$4 sm:$0xff]   ;;  %vm435_vm0 = vcmask 523264  }
  0xb9   : > { %2138 = vsyncadd (%p2558_p5), [#allocation12], 4294963200  ;;  %471 = vmatprep.mubr.bf16.mxu0 %v2171_v0  ;;  %439 = vmatprep.subr.bf16.mxu0 %v1765_v1  ;;  %v1768_v3 = vld [vmem:[#allocation5 + $0x14] ss:$8 sps:$4 sm:$0xff]   ;;  %v1770_v4 = vld [vmem:[#allocation5 + $0x10] ss:$8 sps:$4 sm:$0xff]  }
  0xba   : > { %440 = vmatpush1.bf16.msra.mxu0 %v1767_v2  ;;  %v1771_v5 = vld [vmem:[#allocation5 + $0x24] ss:$8 sps:$4 sm:$0xff]   ;;  %v1773_v7 = vld [vmem:[#allocation5 + $0x20] ss:$8 sps:$4 sm:$0xff]   ;;  %v1774_v8 = vld [vmem:[#allocation5 + $0x34] ss:$8 sps:$4 sm:$0xff]  }
  0xbb   : > { %441 = vmatprep.subr.bf16.mxu0 %v1768_v3  ;;  %v1777_v6 = vld [vmem:[#allocation8 + $0x4] ss:$16 sps:$4 sm:$0xff]   ;;  %v1782_v9 = vld [vmem:[#allocation8] ss:$16 sps:$4 sm:$0xff]   ;;  %v370_v13 = vld [vmem:[%s315_s12 + $0x8] sm:$0xff]  ;;  %s1493_s11 = sshll.u32 %s2448_s14, 3 }
  0xbc   : > { %888 = vmatprep.subr.bf16.mxu1 %v1777_v6  ;;  %v1776_v10 = vld [vmem:[#allocation5 + $0x30] ss:$8 sps:$4 sm:$0xff]   ;;  %v1783_v12 = vld [vmem:[#allocation8 + $0x24] ss:$16 sps:$4 sm:$0xff]   ;;  %v1781_v14 = vld [vmem:[#allocation8 + $0xc] ss:$16 sps:$4 sm:$0xff]  }
  0xbd   : > { %v369_v11 = vld [vmem:[%s315_s12] sm:$0xff]  ;;  %889 = vmatpush1.bf16.msra.mxu1 %v1782_v9  ;;  %v1779_v17 = vld [vmem:[#allocation8 + $0x8] ss:$16 sps:$4 sm:$0xff]   ;;  %v1787_v21 = vld [vmem:[#allocation8 + $0x2c] ss:$16 sps:$4 sm:$0xff]   ;;  %s1609_s13 = sshll.u32 %s2236_s30, 7 }
  0xbe   : > { %442 = vmatpush1.bf16.msra.mxu0 %v1770_v4  ;;  %890 = vmatprep.subr.bf16.mxu1 %v1783_v12  ;;  %v1788_v15 = vld [vmem:[#allocation8 + $0x20] ss:$16 sps:$4 sm:$0xff]   ;;  %v1789_v16 = vld [vmem:[#allocation8 + $0x44] ss:$16 sps:$4 sm:$0xff]   ;;  %v371_v18 = vpack.c.bf16 %v370_v13, %v369_v11  ;;  %v1785_v22 = vld [vmem:[#allocation8 + $0x28] ss:$16 sps:$4 sm:$0xff]   ;;  %s2485_s19 = scalar_lea.hbm %s2538_s7, %s1609_s13 }
  0xbf   : > { %443 = vmatprep.subr.bf16.mxu0 %v1771_v5  ;;  %v1794_v19 = vld [vmem:[#allocation8 + $0x40] ss:$16 sps:$4 sm:$0xff]   ;;  %v1795_v20 = vld [vmem:[#allocation8 + $0x64] ss:$16 sps:$4 sm:$0xff]   ;;  %v1793_v25 = vld [vmem:[#allocation8 + $0x4c] ss:$16 sps:$4 sm:$0xff]  }
  0xc0   : > { %v1800_v23 = vld [vmem:[#allocation8 + $0x60] ss:$16 sps:$4 sm:$0xff]   ;;  %v1801_v24 = vld [vmem:[#allocation8 + $0x84] ss:$16 sps:$4 sm:$0xff]   ;;  %v1791_v26 = vld [vmem:[#allocation8 + $0x48] ss:$16 sps:$4 sm:$0xff]  }
  0xc1   : > { %891 = vmatpush1.bf16.msra.mxu1 %v1788_v15  ;;  %v1806_v27 = vld [vmem:[#allocation8 + $0x80] ss:$16 sps:$4 sm:$0xff]   ;;  %v1807_v28 = vld [vmem:[#allocation8 + $0xa4] ss:$16 sps:$4 sm:$0xff]   ;;  %v1799_v29 = vld [vmem:[#allocation8 + $0x6c] ss:$16 sps:$4 sm:$0xff]  }
  0xc2   : > { %444 = vmatpush1.bf16.msra.mxu0 %v1773_v7  ;;  %892 = vmatprep.subr.bf16.mxu1 %v1789_v16  ;;  %v1797_v30 = vld [vmem:[#allocation8 + $0x68] ss:$16 sps:$4 sm:$0xff]   ;;  %v1812_v31 = vld [vmem:[#allocation8 + $0xa0] ss:$16 sps:$4 sm:$0xff]   ;;  %v1813_v32 = vld [vmem:[#allocation8 + $0xc4] ss:$16 sps:$4 sm:$0xff]  }
  0xc3   : > { %445 = vmatprep.subr.bf16.mxu0 %v1774_v8  ;;  %v1805_v33 = vld [vmem:[#allocation8 + $0x8c] ss:$16 sps:$4 sm:$0xff]   ;;  %v1803_v34 = vld [vmem:[#allocation8 + $0x88] ss:$16 sps:$4 sm:$0xff]   ;;  %v1818_v35 = vld [vmem:[#allocation8 + $0xc0] ss:$16 sps:$4 sm:$0xff]  }
  0xc4   : > { %v1819_v36 = vld [vmem:[#allocation8 + $0xe4] ss:$16 sps:$4 sm:$0xff]   ;;  %v1811_v37 = vld [vmem:[#allocation8 + $0xac] ss:$16 sps:$4 sm:$0xff]   ;;  %v1809_v38 = vld [vmem:[#allocation8 + $0xa8] ss:$16 sps:$4 sm:$0xff]  }
  0xc5   : > { %893 = vmatpush1.bf16.msra.mxu1 %v1794_v19  ;;  %v1824_v39 = vld [vmem:[#allocation8 + $0xe0] ss:$16 sps:$4 sm:$0xff]   ;;  %v1825_v40 = vld [vmem:[#allocation8 + $0x104] ss:$16 sps:$4 sm:$0xff]   ;;  %v1817_v41 = vld [vmem:[#allocation8 + $0xcc] ss:$16 sps:$4 sm:$0xff]  }
  0xc6   : > { %446 = vmatpush1.bf16.msra.mxu0 %v1776_v10  ;;  %894 = vmatprep.subr.bf16.mxu1 %v1795_v20  ;;  %v1815_v42 = vld [vmem:[#allocation8 + $0xc8] ss:$16 sps:$4 sm:$0xff]   ;;  %v1830_v43 = vld [vmem:[#allocation8 + $0x100] ss:$16 sps:$4 sm:$0xff]   ;;  %v1831_v44 = vld [vmem:[#allocation8 + $0x124] ss:$16 sps:$4 sm:$0xff]  }
  0xc7   : > { %931 = vmatprep.subr.bf16.mxu0 %v1781_v14  ;;  %v1823_v45 = vld [vmem:[#allocation8 + $0xec] ss:$16 sps:$4 sm:$0xff]   ;;  %v1821_v46 = vld [vmem:[#allocation8 + $0xe8] ss:$16 sps:$4 sm:$0xff]   ;;  %v1836_v48 = vld [vmem:[#allocation8 + $0x120] ss:$16 sps:$4 sm:$0xff]   ;;  %v387_v14 = vlaneseq }
  0xc8   : > { %v1829_v47 = vld [vmem:[#allocation8 + $0x10c] ss:$16 sps:$4 sm:$0xff]   ;;  %v1837_v49 = vld [vmem:[#allocation8 + $0x144] ss:$16 sps:$4 sm:$0xff]   ;;  %v1842_v50 = vld [vmem:[#allocation8 + $0x140] ss:$16 sps:$4 sm:$0xff]  }
  0xc9   : > { %1502 = vmatmul.mubr.msk.bf16.vlgmr.msra.gmra.mrb[0].mxu0 %vm435_vm0, %v371_v18  ;;  %895 = vmatpush1.bf16.msra.mxu1 %v1800_v23  ;;  %v1827_v51 = vld [vmem:[#allocation8 + $0x108] ss:$16 sps:$4 sm:$0xff]   ;;  %v1843_v52 = vld [vmem:[#allocation8 + $0x164] ss:$16 sps:$4 sm:$0xff]   ;;  %v1835_v53 = vld [vmem:[#allocation8 + $0x12c] ss:$16 sps:$4 sm:$0xff]  }
  0xca   : > { %932 = vmatpush1.bf16.msra.mxu0 %v1779_v17  ;;  %896 = vmatprep.subr.bf16.mxu1 %v1801_v24  ;;  %v1848_v54 = vld [vmem:[#allocation8 + $0x160] ss:$16 sps:$4 sm:$0xff]   ;;  %v1833_v55 = vld [vmem:[#allocation8 + $0x128] ss:$16 sps:$4 sm:$0xff]   ;;  %v1849_v56 = vld [vmem:[#allocation8 + $0x184] ss:$16 sps:$4 sm:$0xff]  }
  0xcb   : > { %933 = vmatprep.subr.bf16.mxu0 %v1787_v21  ;;  %v1841_v57 = vld [vmem:[#allocation8 + $0x14c] ss:$16 sps:$4 sm:$0xff]   ;;  %v1854_v58 = vld [vmem:[#allocation8 + $0x180] ss:$16 sps:$4 sm:$0xff]   ;;  %v1839_v59 = vld [vmem:[#allocation8 + $0x148] ss:$16 sps:$4 sm:$0xff]  }
  0xcc   : > { %v1855_v60 = vld [vmem:[#allocation8 + $0x1a4] ss:$16 sps:$4 sm:$0xff]   ;;  %v1847_v61 = vld [vmem:[#allocation8 + $0x16c] ss:$16 sps:$4 sm:$0xff]   ;;  %v1845_v62 = vld [vmem:[#allocation8 + $0x168] ss:$16 sps:$4 sm:$0xff]  }
  0xcd   : > { %897 = vmatpush1.bf16.msra.mxu1 %v1806_v27  ;;  %v1853_v63 = vld [vmem:[#allocation8 + $0x18c] ss:$16 sps:$4 sm:$0xff]   ;;  %v1851_v0 = vld [vmem:[#allocation8 + $0x188] ss:$16 sps:$4 sm:$0xff]   ;;  %v1860_v3 = vld [vmem:[#allocation8 + $0x1a0] ss:$16 sps:$4 sm:$0xff]  }
  0xce   : > { %934 = vmatpush1.bf16.msra.mxu0 %v1785_v22  ;;  %898 = vmatprep.subr.bf16.mxu1 %v1807_v28  ;;  %v1859_v1 = vld [vmem:[#allocation8 + $0x1ac] ss:$16 sps:$4 sm:$0xff]   ;;  %v1857_v2 = vld [vmem:[#allocation8 + $0x1a8] ss:$16 sps:$4 sm:$0xff]   ;;  %v1861_v4 = vld [vmem:[#allocation8 + $0x1c4] ss:$16 sps:$4 sm:$0xff]  }
  0xcf   : > { %935 = vmatprep.subr.bf16.mxu0 %v1793_v25  ;;  %v1865_v5 = vld [vmem:[#allocation8 + $0x1cc] ss:$16 sps:$4 sm:$0xff]   ;;  %v1863_v6 = vld [vmem:[#allocation8 + $0x1c8] ss:$16 sps:$4 sm:$0xff]   ;;  %v1866_v7 = vld [vmem:[#allocation8 + $0x1c0] ss:$16 sps:$4 sm:$0xff]  }
  0xd0   : > { %v1867_v8 = vld [vmem:[#allocation8 + $0x1e4] ss:$16 sps:$4 sm:$0xff]   ;;  %v1871_v9 = vld [vmem:[#allocation8 + $0x1ec] ss:$16 sps:$4 sm:$0xff]   ;;  %v1869_v10 = vld [vmem:[#allocation8 + $0x1e8] ss:$16 sps:$4 sm:$0xff]  }
  0xd1   : > { %899 = vmatpush1.bf16.msra.mxu1 %v1812_v31  ;;  %v1872_v11 = vld [vmem:[#allocation8 + $0x1e0] ss:$16 sps:$4 sm:$0xff]   ;;  %v388_v15 = vshrl.u32 %v387_v14, 7  ;;  %v373_v18 = vld [vmem:[#allocation7 + $0x8] sm:$0xff]  ;;  %s365_s17 = scalar_lea.vmem [#allocation13], %s1493_s11  ;;  %s1341_s23 = scalar_lea.sflag [#allocation4], %s2448_s14 }
  0xd2   : > { %936 = vmatpush1.bf16.msra.mxu0 %v1791_v26  ;;  %900 = vmatprep.subr.bf16.mxu1 %v1813_v32  ;;  %v1873_v12 = vld [vmem:[#allocation11 + $0x40] sm:$0xff]   ;;  %v372_v17 = vld [vmem:[#allocation7] sm:$0xff]  ;;  %s1354_s9 = sshll.u32 %s365_s17, 4  ;;  %p2559_p7 = scmp.ne.s32.totalorder %s2548_s16, 0  ;;  %s2487_s9 = int_to_ptr.vmem [resolvable:$true] %s1354_s9 }
  0xd3   : > { %937 = vmatprep.subr.bf16.mxu0 %v1799_v29  ;;  %v1874_v13 = vld [vmem:[#allocation11 + $0xc0] sm:$0xff]   ;;  %v2468_v16 = vsub.s32 0, %v388_v15  ;;  %s2079_s22 = scalar_lea.vmem %s2487_s9, 128  ;;  %s2172_s30 = smov [#allocation13]  }
  0xd4   : > { %p2080_p2 = scmp.ne.s32.totalorder %s2487_s9, %s2079_s22  ;;  %s2083_s21 = sshll.u32 %s2172_s30, 4  ;;  %s2084_s21 = int_to_ptr.vmem [resolvable:$false] %s2083_s21 }
  0xd5   : > { %901 = vmatpush1.bf16.msra.mxu1 %v1818_v35  ;;  %v390_v19 = vrot.slane %v372_v17, %v2468_v16  ;;  %v394_v20 = vrot.slane %v373_v18, %v2468_v16  ;;  %v1875_v35 = vld [vmem:[#allocation11] sm:$0xff]   ;;  %s2085_s12 = scalar_lea.vmem %s2084_s21, 256  ;;  %p2086_p11 = scmp.lt.s32.totalorder %s2487_s9, %s2084_s21 }
  0xd6   : > { %938 = vmatpush1.bf16.msra.mxu0 %v1797_v30  ;;  %902 = vmatprep.subr.bf16.mxu1 %v1819_v36  ;;  %v1876_v36 = vld [vmem:[#allocation11 + $0x80] sm:$0xff]   ;;  %p2081_p10 = pnand %p2080_p2, %p2559_p7  ;;  %p2087_p12 = scmp.lt.s32.totalorder %s2085_s12, %s2079_s22 }
  0xd7   : > { %939 = vmatprep.subr.bf16.mxu0 %v1805_v33 }
  0xd8   : > { %p2082_p1 = pneg %p2081_p10  ;;  %p2088_p13 = por %p2087_p12, %p2086_p11 }
  0xd9   : > { %903 = vmatpush1.bf16.msra.mxu1 %v1824_v39  ;;  %v1879_v39 = vld [vmem:[#allocation11 + $0x8] sm:$0xff]  }
  0xda   : > { %940 = vmatpush1.bf16.msra.mxu0 %v1803_v34  ;;  %904 = vmatprep.subr.bf16.mxu1 %v1825_v40  ;;  %v1880_v40 = vld [vmem:[#allocation11 + $0x88] sm:$0xff]   ;;  %p2089_p8 = pnand %p2088_p13, %p2082_p1 }
  0xdb   : > { %941 = vmatprep.subr.bf16.mxu0 %v1811_v37  ;;  %v1877_v37 = vld [vmem:[#allocation11 + $0x48] sm:$0xff]  }
  0xdd   : > { %905 = vmatpush1.bf16.msra.mxu1 %v1830_v43  ;;  %v1883_v43 = vld [vmem:[#allocation11 + $0x10] sm:$0xff]  }
  0xde   : > { %942 = vmatpush1.bf16.msra.mxu0 %v1809_v38  ;;  %906 = vmatprep.subr.bf16.mxu1 %v1831_v44  ;;  %v1878_v38 = vld [vmem:[#allocation11 + $0xc8] sm:$0xff]   ;;  %v1884_v44 = vld [vmem:[#allocation11 + $0x90] sm:$0xff]  }
  0xdf   : > { %943 = vmatprep.subr.bf16.mxu0 %v1817_v41  ;;  %v1881_v41 = vld [vmem:[#allocation11 + $0x50] sm:$0xff]  }
  0xe1   : > { %907 = vmatpush1.bf16.msra.mxu1 %v1836_v48  ;;  %v1888_v48 = vld [vmem:[#allocation11 + $0x98] sm:$0xff]  }
  0xe2   : > { %944 = vmatpush1.bf16.msra.mxu0 %v1815_v42  ;;  %908 = vmatprep.subr.bf16.mxu1 %v1837_v49  ;;  %v1882_v42 = vld [vmem:[#allocation11 + $0xd0] sm:$0xff]   ;;  %v1889_v49 = vld [vmem:[#allocation11 + $0x60] sm:$0xff]  }
  0xe3   : > { %945 = vmatprep.subr.bf16.mxu0 %v1823_v45  ;;  %v1885_v45 = vld [vmem:[#allocation11 + $0x58] sm:$0xff]  }
  0xe5   : > { %909 = vmatpush1.bf16.msra.mxu1 %v1842_v50  ;;  %v1890_v50 = vld [vmem:[#allocation11 + $0xe0] sm:$0xff]  }
  0xe6   : > { %946 = vmatpush1.bf16.msra.mxu0 %v1821_v46  ;;  %910 = vmatprep.subr.bf16.mxu1 %v1843_v52  ;;  %v1886_v46 = vld [vmem:[#allocation11 + $0xd8] sm:$0xff]   ;;  %v1892_v52 = vld [vmem:[#allocation11 + $0xa0] sm:$0xff]  }
  0xe7   : > { %947 = vmatprep.subr.bf16.mxu0 %v1829_v47  ;;  %v1887_v47 = vld [vmem:[#allocation11 + $0x18] sm:$0xff]  }
  0xe9   : > { %911 = vmatpush1.bf16.msra.mxu1 %v1848_v54  ;;  %v1894_v54 = vld [vmem:[#allocation11 + $0xe8] sm:$0xff]  }
  0xea   : > { %948 = vmatpush1.bf16.msra.mxu0 %v1827_v51  ;;  %912 = vmatprep.subr.bf16.mxu1 %v1849_v56  ;;  %v1891_v51 = vld [vmem:[#allocation11 + $0x20] sm:$0xff]   ;;  %v1896_v56 = vld [vmem:[#allocation11 + $0xa8] sm:$0xff]  }
  0xeb   : > { %949 = vmatprep.subr.bf16.mxu0 %v1835_v53  ;;  %v1893_v53 = vld [vmem:[#allocation11 + $0x68] sm:$0xff]  }
  0xed   : > { %913 = vmatpush1.bf16.msra.mxu1 %v1854_v58  ;;  %v1898_v58 = vld [vmem:[#allocation11 + $0xf0] sm:$0xff]  }
  0xee   : > { %950 = vmatpush1.bf16.msra.mxu0 %v1833_v55  ;;  %914 = vmatprep.subr.bf16.mxu1 %v1855_v60  ;;  %v1895_v55 = vld [vmem:[#allocation11 + $0x28] sm:$0xff]   ;;  %v1900_v60 = vld [vmem:[#allocation11 + $0xb0] sm:$0xff]  }
  0xef   : > { %951 = vmatprep.subr.bf16.mxu0 %v1841_v57  ;;  %v1897_v57 = vld [vmem:[#allocation11 + $0x70] sm:$0xff]  }
  0xf1   : > { %915 = vmatpush1.bf16.msra.mxu1 %v1860_v3  ;;  %v375_v3 = vld [vmem:[#allocation10 + $0x8] sm:$0xff] }
  0xf2   : > { %952 = vmatpush1.bf16.msra.mxu0 %v1839_v59  ;;  %916 = vmatprep.subr.bf16.mxu1 %v1861_v4  ;;  %v1899_v59 = vld [vmem:[#allocation11 + $0x30] sm:$0xff]   ;;  %v377_v4 = vld [vmem:[#allocation10 + $0x18] sm:$0xff] }
  0xf3   : > { %953 = vmatprep.subr.bf16.mxu0 %v1847_v61  ;;  %v1901_v61 = vld [vmem:[#allocation11 + $0x78] sm:$0xff]  }
  0xf5   : > { %917 = vmatpush1.bf16.msra.mxu1 %v1866_v7  ;;  %v559_v7 = vrot.slane %v375_v3, %v2468_v16 }
  0xf6   : > { %954 = vmatpush1.bf16.msra.mxu0 %v1845_v62  ;;  %918 = vmatprep.subr.bf16.mxu1 %v1867_v8  ;;  %v1902_v62 = vld [vmem:[#allocation11 + $0xf8] sm:$0xff]   ;;  %v567_v8 = vrot.slane %v377_v4, %v2468_v16 }
  0xf7   : > { %955 = vmatprep.subr.bf16.mxu0 %v1853_v63  ;;  %v1903_v63 = vld [vmem:[#allocation11 + $0x38] sm:$0xff]  }
  0xf9   : > { %919 = vmatpush1.bf16.msra.mxu1 %v1872_v11 }
  0xfa   : > { %956 = vmatpush1.bf16.msra.mxu0 %v1851_v0  ;;  %1615 = vmatprep.subr.bf16.mxu1 %v1873_v12  ;;  %v1904_v0 = vld [vmem:[#allocation11 + $0xb8] sm:$0xff]  }
  0xfb   : > { %957 = vmatprep.subr.bf16.mxu0 %v1859_v1  ;;  %v374_v1 = vld [vmem:[#allocation10] sm:$0xff] }
  0xfe   : > { %958 = vmatpush1.bf16.msra.mxu0 %v1857_v2  ;;  %v376_v2 = vld [vmem:[#allocation10 + $0x10] sm:$0xff] }
  0xff   : > { %959 = vmatprep.subr.bf16.mxu0 %v1865_v5  ;;  %v555_v5 = vrot.slane %v374_v1, %v2468_v16 }
 0x102   : > { %960 = vmatpush1.bf16.msra.mxu0 %v1863_v6  ;;  %v563_v6 = vrot.slane %v376_v2, %v2468_v16 }
 0x103   : > { %961 = vmatprep.subr.bf16.mxu0 %v1871_v9 }
 0x106   : > { %962 = vmatpush1.bf16.msra.mxu0 %v1869_v10 }
 0x107   : > { %1637 = vmatprep.subr.bf16.mxu0 %v1874_v13 }
 0x19c   : > { %v473_v21 = vpop.f32.mrb[0].mxu0 }
 0x19d   : > { %v474_v22 = vadd.f32 %v473_v21, %v390_v19  ;;  %v475_v23 = vpop.f32.mrb[1].mxu0 }
 0x19e   : > { %v476_v24 = vadd.f32 %v475_v23, %v394_v20  ;;  %v477_v25 = vpop.f32.mrb[2].mxu0 }
 0x19f   : > { %v478_v26 = vadd.f32 %v477_v25, %v390_v19  ;;  %v479_v27 = vpop.f32.mrb[3].mxu0  ;;  %v482_v29 = vmax.f32 %v474_v22, 0.0 }
 0x1a0   : > { %v480_v28 = vadd.f32 %v479_v27, %v394_v20  ;;  %v483_v31 = vmax.f32 %v476_v24, 0.0 }
 0x1a1   : > { %v484_v30 = vmax.f32 %v478_v26, 0.0 }
 0x1a2   : > { %v485_v32 = vmax.f32 %v480_v28, 0.0 }
 0x1a3   : > { %v486_v33 = vpack.c.bf16 %v484_v30, %v482_v29 }
 0x1a4   : > { %v487_v34 = vpack.c.bf16 %v485_v32, %v483_v31 }
 0x1a6   : > { %920 = vmatprep.mubr.bf16.mxu1 %v487_v34  ;;  %963 = vmatprep.mubr.bf16.mxu0 %v487_v34 }
 0x1a7   : > { %921 = vmatmul.mubr.bf16.vlgmr.msra.gmra.mrb[0].mxu1 %v486_v33  ;;  %964 = vmatmul.mubr.bf16.vlgmr.msra.gmra.mrb[4].mxu0 %v486_v33 }
 0x1a8   : > { %1616 = vmatpush3.bf16.msra.mxu1 %v1875_v35  ;;  %1638 = vmatpush3.bf16.msra.mxu0 %v1876_v36 }
 0x1a9   : > { %1617 = vmatprep.subr.bf16.mxu1 %v1877_v37  ;;  %1639 = vmatprep.subr.bf16.mxu0 %v1878_v38  ;;  %v378_v38 = vld [vmem:[%s2537_s6] sm:$0xff] }
 0x1ac   : > { %1618 = vmatpush3.bf16.msra.mxu1 %v1879_v39  ;;  %1640 = vmatpush3.bf16.msra.mxu0 %v1880_v40 }
 0x1ad   : > { %1619 = vmatprep.subr.bf16.mxu1 %v1881_v41  ;;  %1641 = vmatprep.subr.bf16.mxu0 %v1882_v42  ;;  %v1053_v41 = vrot.slane %v378_v38, %v2468_v16 }
 0x1b0   : > { %1620 = vmatpush3.bf16.msra.mxu1 %v1883_v43  ;;  %1642 = vmatpush3.bf16.msra.mxu0 %v1884_v44 }
 0x1b1   : > { %1621 = vmatprep.subr.bf16.mxu1 %v1885_v45  ;;  %1643 = vmatprep.subr.bf16.mxu0 %v1886_v46 }
 0x1b4   : > { %1622 = vmatpush3.bf16.msra.mxu1 %v1887_v47  ;;  %1644 = vmatpush3.bf16.msra.mxu0 %v1888_v48 }
 0x1b5   : > { %1623 = vmatprep.subr.bf16.mxu1 %v1889_v49  ;;  %1645 = vmatprep.subr.bf16.mxu0 %v1890_v50 }
 0x1b8   : > { %1624 = vmatpush3.bf16.msra.mxu1 %v1891_v51  ;;  %1646 = vmatpush3.bf16.msra.mxu0 %v1892_v52 }
 0x1b9   : > { %1625 = vmatprep.subr.bf16.mxu1 %v1893_v53  ;;  %1647 = vmatprep.subr.bf16.mxu0 %v1894_v54 }
 0x1bc   : > { %1626 = vmatpush3.bf16.msra.mxu1 %v1895_v55  ;;  %1648 = vmatpush3.bf16.msra.mxu0 %v1896_v56 }
 0x1bd   : > { %1627 = vmatprep.subr.bf16.mxu1 %v1897_v57  ;;  %1649 = vmatprep.subr.bf16.mxu0 %v1898_v58 }
 0x1c0   : > { %1628 = vmatpush3.bf16.msra.mxu1 %v1899_v59  ;;  %1650 = vmatpush3.bf16.msra.mxu0 %v1900_v60 }
 0x1c1   : > { %1629 = vmatprep.subr.bf16.mxu1 %v1901_v61  ;;  %1651 = vmatprep.subr.bf16.mxu0 %v1902_v62 }
 0x1c4   : > { %1630 = vmatpush3.bf16.msra.mxu1 %v1903_v63  ;;  %1652 = vmatpush3.bf16.msra.mxu0 %v1904_v0 }
 0x27a   : > { %v922_v9 = vpop.f32.mrb[0].mxu1  ;;  %v965_v10 = vpop.f32.mrb[4].mxu0 }
 0x27b   : > { %v923_v11 = vadd.f32 %v922_v9, %v555_v5  ;;  %v966_v12 = vadd.f32 %v965_v10, %v563_v6  ;;  %v924_v13 = vpop.f32.mrb[1].mxu1  ;;  %v967_v14 = vpop.f32.mrb[5].mxu0 }
 0x27c   : > { %v925_v15 = vadd.f32 %v924_v13, %v559_v7  ;;  %v968_v17 = vadd.f32 %v967_v14, %v567_v8  ;;  %v926_v18 = vpop.f32.mrb[2].mxu1  ;;  %v969_v19 = vpop.f32.mrb[6].mxu0 }
 0x27d   : > { %v927_v20 = vadd.f32 %v926_v18, %v555_v5  ;;  %v970_v21 = vadd.f32 %v969_v19, %v563_v6  ;;  %v928_v22 = vpop.f32.mrb[3].mxu1  ;;  %v971_v23 = vpop.f32.mrb[7].mxu0  ;;  %v974_v26 = vmax.f32 %v923_v11, 0.0  ;;  %v976_v27 = vmax.f32 %v966_v12, 0.0 }
 0x27e   : > { %v929_v24 = vadd.f32 %v928_v22, %v559_v7  ;;  %v972_v25 = vadd.f32 %v971_v23, %v567_v8  ;;  %v975_v30 = vmax.f32 %v925_v15, 0.0  ;;  %v977_v31 = vmax.f32 %v968_v17, 0.0 }
 0x27f   : > { %v978_v28 = vmax.f32 %v927_v20, 0.0  ;;  %v980_v29 = vmax.f32 %v970_v21, 0.0 }
 0x280   : > { %v979_v32 = vmax.f32 %v929_v24, 0.0  ;;  %v981_v33 = vmax.f32 %v972_v25, 0.0 }
 0x281   : > { %v982_v34 = vpack.c.bf16 %v978_v28, %v974_v26  ;;  %v984_v35 = vpack.c.bf16 %v980_v29, %v976_v27 }
 0x282   : > { %v983_v36 = vpack.c.bf16 %v979_v32, %v975_v30  ;;  %v985_v37 = vpack.c.bf16 %v981_v33, %v977_v31 }
 0x284   : > { %1278 = vmatprep.mubr.bf16.mxu1 %v983_v36  ;;  %1319 = vmatprep.mubr.bf16.mxu0 %v985_v37 }
 0x285   : > { %1279 = vmatmul.mubr.bf16.vlgmr.msra.gmra.mrb[4].mxu1 %v982_v34  ;;  %1320 = vmatmul.mubr.bf16.vlgmr.msra.gmra.mrb[8].mxu0 %v984_v35 }
 0x358   : > { %v1631_v39 = vpop.f32.mrb[4].mxu1  ;;  %v1653_v40 = vpop.f32.mrb[8].mxu0 }
 0x359   : > { %v1632_v42 = vpop.f32.mrb[5].mxu1  ;;  %v1654_v43 = vpop.f32.mrb[9].mxu0 }
 0x35a   : > { %v1633_v44 = vadd.f32 %v1632_v42, %v1631_v39  ;;  %v1655_v45 = vadd.f32 %v1654_v43, %v1653_v40  ;;  %v1634_v46 = vpop.f32.mrb[6].mxu1  ;;  %v1656_v47 = vpop.f32.mrb[10].mxu0 }
 0x35b   : > { %v1635_v48 = vpop.f32.mrb[7].mxu1  ;;  %v1657_v49 = vpop.f32.mrb[11].mxu0 }
 0x35c   : > { %v1281_v50 = vadd.f32 %v1633_v44, %v1053_v41  ;;  %v1636_v51 = vadd.f32 %v1635_v48, %v1634_v46  ;;  %v1658_v52 = vadd.f32 %v1657_v49, %v1656_v47 }
 0x35e   : > { %v1322_v53 = vadd.f32 %v1655_v45, %v1281_v50  ;;  %v1284_v54 = vadd.f32 %v1636_v51, %v1053_v41 }
 0x360   : > { %v1325_v55 = vadd.f32 %v1658_v52, %v1284_v54  ;;  %1905 = vtanh.f32 %v1322_v53 }
 0x362   : > { %1907 = vtanh.f32 %v1325_v55 }
 0x36a   : > { %v1906_v16 = vpop.eup %1905 }
 0x36c   : > { %v1908_v56 = vpop.eup %1907 }
 0x36d   : > { %v1613_v57 = vpack.c.bf16 %v1908_v56, %v1906_v16 }
 0x36f   : > { %1614 = vst [vmem:[%s365_s17] sm:$0xff] %v1613_v57  }
 0x370   : > { %2092 = shalt.err (!%p2089_p8)
}
 0x371   : > { %s2093_s8 = scalar_lea.hbm %s2485_s19, 128  ;;  %s2097_s13 = scalar_lea.hbm %s2538_s7, 256 }
 0x372   : > { %p2094_p6 = scmp.ne.s32.totalorder %s2485_s19, %s2093_s8  ;;  %p2098_p3 = scmp.lt.u32.totalorder %s2485_s19, %s2538_s7 }
 0x373   : > { %p2099_p0 = scmp.lt.u32.totalorder %s2097_s13, %s2093_s8  ;;  %p2101_p2 = scmp.lt.u32.totalorder %s2093_s8, %s2485_s19 }
 0x374   : > { %p2095_p9 = pnand %p2094_p6, %p2559_p7 }
 0x375   : > { %p2100_p5 = por %p2099_p0, %p2098_p3 }
 0x376   : > { %p2096_p4 = pneg %p2095_p9 }
 0x377   : > { %p2102_p10 = por %p2101_p2, %p2100_p5 }
 0x379   : > { %p2103_p1 = pnand %p2102_p10, %p2096_p4 }
 0x37b   : > { %2106 = shalt.err (!%p2103_p1)
}
 0x37c   : > { %s2173_s10 = smov 64   ;;  %s2174_s22 = smov 4  }
 0x37d   : > { %1681 = dma.vmem_to_hbm [thread:$0]  (%p2559_p7), %s2487_s9, 128, %s2485_s19, %s1341_s23, %s2173_s10, %s2173_s10, %s2174_s22  }
 0x37e PF: > { %s1369_s30 = sand.u32 1, %s2145_s24   ;;  %p2560_p11 = scmp.ne.s32.totalorder %s2549_s29, 0 }
 0x37f   : > { %p2561_p12 = scmp.ge.s32.totalorder %s2157_s27, 2  ;;  %s1370_s21 = scalar_lea.sflag [#allocation4], %s1369_s30 }
 0x381   : > { %p1704_p13 = pnand %p2561_p12, %p2560_p11 }
 0x383   : > { %2140 = dma.done.wait (!%p1704_p13), %s1370_s21, 128  }
 0x384   : > { %2142 = vsyncadd (!%p1704_p13), %s1370_s21, 4294967168  ;;  %p23_p8 = scmp.ge.s32.totalorder %s2372_s15, 4   ;;  %s2562_s24 = smov %s2149_s25 }
 0x385   : > { %s2563_s25 = smov %s2153_s26  ;;  %s2564_s26 = smov %s2384_s20 }
 0x386   : > { %s2565_s27 = smov %s2372_s15  ;;  %25 = sbr.rel (!%p23_p8) target bundleno = 8 (0x8), region = 113 }
 0x38d   :  { %1375 = vsyncpa [#allocation3], 1 }
 0x38e   :  { %1377 = vsyncpa [#allocation3 + $0x1], 1 }
 0x38f   :  { %1378 = vsyncpa [#allocation6], 1 }
 0x390   :  { %1379 = vsyncpa [#allocation9], 1 }
 0x391   :  { %1380 = vsyncpa [#allocation12], 1 }
 0x392   :  { %1381 = vsyncpa [#allocation4], 1 }
 0x393   :  { %1383 = vsyncpa [#allocation4 + $0x1], 1 }

</bundles_post_ra>
